<compile_context>
chip_gen: v5e
topology: v5e:2x2
jax: 0.10.0
libtpu: 0.0.40
codegen_flags: <defaults>
</compile_context>

<pallas_src>
import math
from functools import partial

import jax
import jax.numpy as jnp
from jax.experimental import pallas as pl
from jax.experimental.pallas import tpu as pltpu

LAYER_SIZE = 256       # hidden width of each head
MIN_OUT_LANES = 128    # lane-dense padded output width
MAX_TB = 256           # max batch-tile rows per grid step


def _round_up(x, m):
    return (x + m - 1) // m * m


# --------------------------------------------------------------------------
# Kernel
# --------------------------------------------------------------------------
def _dnn_kernel(x_ref, w1_ref, b1_ref, w2_ref, b2_ref, out_ref):
    """Fused two-headed MLP for one batch tile.

    w1/b1 hold both heads' first-layer params side by side (F, 2H) / (1, 2H).
    w2/b2 hold both heads' second-layer params scattered into one lane-dense
    (2H, 128) / (1, 128) slab (policy in lanes 0..A-1, value in lane A).
    """
    x = x_ref[...]                                                   # (TB, F) f32
    h = jnp.dot(x, w1_ref[...], preferred_element_type=jnp.float32) + b1_ref[...]
    h = jnp.maximum(h, 0.0)                                          # (TB, 2H)
    out_ref[...] = (jnp.dot(h, w2_ref[...], preferred_element_type=jnp.float32)
                    + b2_ref[...])                                   # (TB, 128)


# --------------------------------------------------------------------------
# Wrapper
# --------------------------------------------------------------------------
@partial(jax.jit, static_argnames=("n_actions",))
def dnn_forward(x, packed, n_actions):
    """x: (B, F) float; packed: dict from pack_dnn_params."""
    B, F = x.shape
    x = x.astype(jnp.float32)

    # Batch tiling: pad B up to a multiple of the tile (sublane-aligned).
    if B <= MAX_TB:
        tb = max(8, _round_up(B, 8))
        b_pad = tb
    else:
        tb = MAX_TB
        b_pad = _round_up(B, tb)
    if b_pad != B:
        x = jnp.pad(x, ((0, b_pad - B), (0, 0)))

    two_h = packed["w1"].shape[1]          # 2 * LAYER_SIZE
    out_lanes = packed["w2"].shape[1]      # lane-dense padded output width

    out = pl.pallas_call(
        _dnn_kernel,
        out_shape=jax.ShapeDtypeStruct((b_pad, out_lanes), jnp.float32),
        grid_spec=pl.GridSpec(
            grid=(b_pad // tb,),
            in_specs=[
                pl.BlockSpec((tb, F), lambda i: (i, 0)),             # x tile
                pl.BlockSpec((F, two_h), lambda i: (0, 0)),          # W1 (resident)
                pl.BlockSpec((1, two_h), lambda i: (0, 0)),          # b1 (resident)
                pl.BlockSpec((two_h, out_lanes), lambda i: (0, 0)),  # W2 (resident)
                pl.BlockSpec((1, out_lanes), lambda i: (0, 0)),      # b2 (resident)
            ],
            out_specs=pl.BlockSpec((tb, out_lanes), lambda i: (i, 0)),
        ),
        compiler_params=pltpu.CompilerParams(
            dimension_semantics=("parallel",),
        ),
    )(x, packed["w1"], packed["b1"], packed["w2"], packed["b2"])

    policy = out[:B, :n_actions]
    value = out[:B, n_actions:n_actions + 1]
    return policy, value


# --------------------------------------------------------------------------
# Parameter init / packing (packing done once, outside per-call path)
# --------------------------------------------------------------------------
def init_dnn_params(key, input_size, n_actions):
    """Deterministic init mimicking torch.nn.Linear default:
       U(-1/sqrt(fan_in), 1/sqrt(fan_in)) for both weight and bias."""
    def linear(key, fan_in, fan_out):
        kw, kb = jax.random.split(key)
        bound = 1.0 / math.sqrt(fan_in)
        w = jax.random.uniform(kw, (fan_in, fan_out), jnp.float32, -bound, bound)
        b = jax.random.uniform(kb, (1, fan_out), jnp.float32, -bound, bound)
        return w, b

    k1, k2, k3, k4 = jax.random.split(key, 4)
    pw1, pb1 = linear(k1, input_size, LAYER_SIZE)
    pw2, pb2 = linear(k2, LAYER_SIZE, n_actions)
    vw1, vb1 = linear(k3, input_size, LAYER_SIZE)
    vw2, vb2 = linear(k4, LAYER_SIZE, 1)
    return dict(pw1=pw1, pb1=pb1, pw2=pw2, pb2=pb2,
                vw1=vw1, vb1=vb1, vw2=vw2, vb2=vb2)


def pack_dnn_params(params):
    """Fuse both heads into two matmuls worth of lane-dense parameters."""
    pw1, pb1 = params["pw1"], params["pb1"]
    pw2, pb2 = params["pw2"], params["pb2"]
    vw1, vb1 = params["vw1"], params["vb1"]
    vw2, vb2 = params["vw2"], params["vb2"]

    H = pw1.shape[1]
    n_actions = pw2.shape[1]
    out_lanes = max(MIN_OUT_LANES, _round_up(n_actions + 1, 128))

    w1 = jnp.concatenate([pw1, vw1], axis=1)        # (F, 2H)
    b1 = jnp.concatenate([pb1, vb1], axis=1)        # (1, 2H)

    w2 = jnp.zeros((2 * H, out_lanes), jnp.float32)
    w2 = w2.at[:H, :n_actions].set(pw2)
    w2 = w2.at[H:, n_actions:n_actions + 1].set(vw2)
    b2 = jnp.zeros((1, out_lanes), jnp.float32)
    b2 = b2.at[0, :n_actions].set(pb2[0])
    b2 = b2.at[0, n_actions].set(vb2[0, 0])
    return dict(w1=w1, b1=b1, w2=w2, b2=b2)


# --------------------------------------------------------------------------
# Pure-JAX reference (unfused) for correctness check
# --------------------------------------------------------------------------
def dnn_reference(x, params):
    x = x.astype(jnp.float32)
    ph = jnp.maximum(x @ params["pw1"] + params["pb1"], 0.0)
    pol = ph @ params["pw2"] + params["pb2"]
    vh = jnp.maximum(x @ params["vw1"] + params["vb1"], 0.0)
    val = vh @ params["vw2"] + params["vb2"]
    return pol, val


if __name__ == "__main__":
    key = jax.random.PRNGKey(0)
    k_param, k_x = jax.random.split(key)

    batch = 8
    input_size = (32,)      # NN uses input_size[0] as feature dim
    n_actions = 4

    params = init_dnn_params(k_param, input_size[0], n_actions)
    packed = pack_dnn_params(params)           # done once, amortized across calls
    x = jax.random.normal(k_x, (batch, input_size[0]), jnp.float32)

    policy, value = dnn_forward(x, packed, n_actions)
    jax.block_until_ready((policy, value))

    # sanity check against the pure-JAX reference
    ref_pol, ref_val = dnn_reference(x, params)
    assert policy.shape == (batch, n_actions) and value.shape == (batch, 1)
    assert jnp.allclose(policy, ref_pol, atol=1e-4, rtol=1e-4)
    assert jnp.allclose(value, ref_val, atol=1e-4, rtol=1e-4)

    print("KERNEL_OK")
</pallas_src>

<mosaic_0001>
module attributes {stable_mosaic.version = 11 : i64} {
  func.func @_dnn_kernel(%arg0: i32, %arg1: memref<8x32xf32, #tpu.memory_space<vmem>>, %arg2: memref<32x512xf32, #tpu.memory_space<vmem>>, %arg3: memref<1x512xf32, #tpu.memory_space<vmem>>, %arg4: memref<512x128xf32, #tpu.memory_space<vmem>>, %arg5: memref<1x128xf32, #tpu.memory_space<vmem>>, %arg6: memref<8x128xf32, #tpu.memory_space<vmem>>) attributes {dimension_semantics = [#tpu.dimension_semantics<parallel>], iteration_bounds = array<i64: 1>, scalar_prefetch = 0 : i64, scratch_operands = 0 : i64, tpu.core_type = #tpu.core_type<tc>, window_params = [{transform_indices = @transform_0, window_bounds = array<i64: 8, 32>}, {pipeline_mode = #tpu.pipeline_mode<synchronous>, transform_indices = @transform_1, window_bounds = array<i64: 32, 512>}, {pipeline_mode = #tpu.pipeline_mode<synchronous>, transform_indices = @transform_2, window_bounds = array<i64: 1, 512>}, {pipeline_mode = #tpu.pipeline_mode<synchronous>, transform_indices = @transform_3, window_bounds = array<i64: 512, 128>}, {pipeline_mode = #tpu.pipeline_mode<synchronous>, transform_indices = @transform_4, window_bounds = array<i64: 1, 128>}, {transform_indices = @transform_5, window_bounds = array<i64: 8, 128>}]} {
    %c0 = arith.constant 0 : index
    %c0_0 = arith.constant 0 : index
    %0 = vector.load %arg1[%c0, %c0_0] : memref<8x32xf32, #tpu.memory_space<vmem>>, vector<8x32xf32>
    %c0_1 = arith.constant 0 : index
    %c0_2 = arith.constant 0 : index
    %1 = vector.load %arg2[%c0_1, %c0_2] : memref<32x512xf32, #tpu.memory_space<vmem>>, vector<32x512xf32>
    %cst = arith.constant dense<0.000000e+00> : vector<8x512xf32>
    %2 = tpu.matmul %0, %1, %cst {dimension_numbers = #tpu.dot_dimension_numbers<[1], [0], [0], [1], [0, 0, 1, 1], [], []>} : vector<8x32xf32>, vector<32x512xf32>, vector<8x512xf32> -> vector<8x512xf32>
    %c0_3 = arith.constant 0 : index
    %c0_4 = arith.constant 0 : index
    %3 = vector.load %arg3[%c0_3, %c0_4] : memref<1x512xf32, #tpu.memory_space<vmem>>, vector<1x512xf32>
    %4 = vector.broadcast %3 : vector<1x512xf32> to vector<8x512xf32>
    %5 = arith.addf %2, %4 : vector<8x512xf32>
    %cst_5 = arith.constant 0.000000e+00 : f32
    %6 = vector.broadcast %cst_5 : f32 to vector<8x512xf32>
    %7 = arith.maximumf %5, %6 : vector<8x512xf32>
    %c0_6 = arith.constant 0 : index
    %c0_7 = arith.constant 0 : index
    %8 = vector.load %arg4[%c0_6, %c0_7] : memref<512x128xf32, #tpu.memory_space<vmem>>, vector<512x128xf32>
    %cst_8 = arith.constant dense<0.000000e+00> : vector<8x128xf32>
    %9 = tpu.matmul %7, %8, %cst_8 {dimension_numbers = #tpu.dot_dimension_numbers<[1], [0], [0], [1], [0, 0, 1, 1], [], []>} : vector<8x512xf32>, vector<512x128xf32>, vector<8x128xf32> -> vector<8x128xf32>
    %c0_9 = arith.constant 0 : index
    %c0_10 = arith.constant 0 : index
    %10 = vector.load %arg5[%c0_9, %c0_10] : memref<1x128xf32, #tpu.memory_space<vmem>>, vector<1x128xf32>
    %11 = vector.broadcast %10 : vector<1x128xf32> to vector<8x128xf32>
    %12 = arith.addf %9, %11 : vector<8x128xf32>
    %c0_11 = arith.constant 0 : index
    %c0_12 = arith.constant 0 : index
    %13 = vector.load %arg6[%c0_11, %c0_12] : memref<8x128xf32, #tpu.memory_space<vmem>>, vector<8x128xf32>
    tpu.vector_store %arg6[%c0_11, %c0_12], %12 {strides = array<i32>} : memref<8x128xf32, #tpu.memory_space<vmem>>, vector<8x128xf32>,
    return
  }
  func.func @transform_0(%arg0: i32) -> (i32, i32) {
    %c0_i32 = arith.constant 0 : i32
    %c0_i32_0 = arith.constant 0 : i32
    return %arg0, %c0_i32 : i32, i32
  }
  func.func @transform_1(%arg0: i32) -> (i32, i32) {
    %c0_i32 = arith.constant 0 : i32
    %c0_i32_0 = arith.constant 0 : i32
    %c0_i32_1 = arith.constant 0 : i32
    return %c0_i32, %c0_i32_0 : i32, i32
  }
  func.func @transform_2(%arg0: i32) -> (i32, i32) {
    %c0_i32 = arith.constant 0 : i32
    %c0_i32_0 = arith.constant 0 : i32
    %c0_i32_1 = arith.constant 0 : i32
    return %c0_i32, %c0_i32_0 : i32, i32
  }
  func.func @transform_3(%arg0: i32) -> (i32, i32) {
    %c0_i32 = arith.constant 0 : i32
    %c0_i32_0 = arith.constant 0 : i32
    %c0_i32_1 = arith.constant 0 : i32
    return %c0_i32, %c0_i32_0 : i32, i32
  }
  func.func @transform_4(%arg0: i32) -> (i32, i32) {
    %c0_i32 = arith.constant 0 : i32
    %c0_i32_0 = arith.constant 0 : i32
    %c0_i32_1 = arith.constant 0 : i32
    return %c0_i32, %c0_i32_0 : i32, i32
  }
  func.func @transform_5(%arg0: i32) -> (i32, i32) {
    %c0_i32 = arith.constant 0 : i32
    %c0_i32_0 = arith.constant 0 : i32
    return %arg0, %c0_i32 : i32, i32
  }
}

</mosaic_0001>

<bundles_post_ra>
// kernel: dnn_forward.1
= control target key start
LH: loop header
LB: loop body
LE: loop exit
PB: predicated region body
PF: predicated region fallthrough
CT: control target
= control target key end

     0   :  { %10 = vsyncpa [#allocation3], 0  ;;  %s525_s0 = inlined_call_operand.hbm [shape: f32[8,32], index: 0, kind: input, shape index: {}]   ;;  %s526_s1 = inlined_call_operand.hbm [shape: f32[32,512], index: 1, kind: input, shape index: {}]   ;;  %s527_s2 = inlined_call_operand.hbm [shape: f32[1,512], index: 2, kind: input, shape index: {}]   ;;  %s528_s3 = inlined_call_operand.hbm [shape: f32[512,128], index: 3, kind: input, shape index: {}]   ;;  %s529_s4 = inlined_call_operand.vmem [shape: f32[1,128], index: 4, kind: input, shape index: {}]   ;;  %s530_s5 = inlined_call_operand.vmem [shape: f32[8,128], index: 5, kind: output, shape index: {}]  }
   0x1   :  { %11 = vsyncpa [#allocation5], 0  ;;  %s28_s20 = sshll.u32 %s526_s1, 4  ;;  %s29_s20 = int_to_ptr.hbm [resolvable:$true] %s28_s20 }
   0x2   :  { %12 = vsyncpa [#allocation8], 0  ;;  %s465_s21 = smov [#allocation4]   ;;  %s18_s25 = sshll.u32 %s525_s0, 4  ;;  %s19_s25 = int_to_ptr.hbm [resolvable:$true] %s18_s25 }
   0x3   :  { %s30_s22 = sshll.u32 %s465_s21, 4  ;;  %s466_s26 = smov 512   ;;  %s31_s22 = int_to_ptr.vmem [resolvable:$true] %s30_s22 }
   0x4   :  { %s467_s27 = smov 32   ;;  %s468_s28 = smov [#allocation2]  }
   0x5   :  { %36 = dma.hbm_to_vmem [thread:$0]  %s29_s20, 2048, %s31_s22, [#allocation5], %s466_s26, %s466_s26, %s467_s27  }
   0x6   :  { %s20_s29 = sshll.u32 %s468_s28, 4  ;;  %s42_s7 = sshll.u32 %s527_s2, 4  ;;  %s21_s29 = int_to_ptr.vmem [resolvable:$true] %s20_s29  ;;  %s43_s7 = int_to_ptr.hbm [resolvable:$true] %s42_s7 }
   0x7   :  { %23 = dma.hbm_to_vmem [thread:$0]  %s19_s25, 128, %s21_s29, [#allocation3]  }
   0x8   :  { %s52_s9 = sshll.u32 %s528_s3, 4  ;;  %s469_s10 = smov [#allocation6]   ;;  %s53_s9 = int_to_ptr.hbm [resolvable:$true] %s52_s9 }
   0x9   :  { %s44_s11 = sshll.u32 %s469_s10, 4  ;;  %s470_s0 = smov [#allocation7]   ;;  %s45_s11 = int_to_ptr.vmem [resolvable:$true] %s44_s11 }
   0xa   :  { %47 = dma.hbm_to_vmem [thread:$0]  %s43_s7, 64, %s45_s11, [#allocation5]  }
   0xb   :  { %s54_s12 = sshll.u32 %s470_s0, 4  ;;  %s471_s13 = smov 128   ;;  %s55_s12 = int_to_ptr.vmem [resolvable:$true] %s54_s12 }
   0xc   :  { %s472_s14 = smov 8  }
   0xd   :  { %60 = dma.hbm_to_vmem [thread:$0]  %s53_s9, 8192, %s55_s12, [#allocation8], %s471_s13, %s471_s13, %s472_s14  }
   0xe   :  { %459 = dma.done.wait [#allocation3], 128  }
   0xf   :  { %460 = vsyncadd [#allocation3], 4294967168 }
  0x10   :  { %461 = dma.done.wait [#allocation5], 2112  }
  0x11   :  { %462 = vsyncadd [#allocation5], 4294965184 }
  0x12   :  { %463 = dma.done.wait [#allocation8], 8192  }
  0x13   :  { %464 = vsyncadd [#allocation8], 4294959104  ;;  %v94_v0 = vld [vmem:[#allocation4 + $0x70] sm:$0xff]  ;;  %v95_v2 = vld [vmem:[#allocation4 + $0x78] sm:$0xff]  ;;  %vm106_vm0 = vcmask 261120  }
  0x14   :  { %v90_v1 = vld [vmem:[#allocation4 + $0x50] sm:$0xff]  ;;  %162 = vmatpush.msra.mxu2 %v94_v0  ;;  %182 = vmatpush.msra.mxu3 %v95_v2  ;;  %v91_v3 = vld [vmem:[#allocation4 + $0x58] sm:$0xff]  ;;  %v92_v6 = vld [vmem:[#allocation4 + $0x60] sm:$0xff] }
  0x15   :  { %v86_v4 = vld [vmem:[#allocation4 + $0x30] sm:$0xff]  ;;  %v87_v5 = vld [vmem:[#allocation4 + $0x38] sm:$0xff]  ;;  %v88_v7 = vld [vmem:[#allocation4 + $0x40] sm:$0xff]  ;;  %122 = vmatpush.msra.mxu0 %v92_v6 }
  0x16   :  { %163 = vmatpush.msra.mxu2 %v90_v1  ;;  %183 = vmatpush.msra.mxu3 %v91_v3  ;;  %v93_v8 = vld [vmem:[#allocation4 + $0x68] sm:$0xff]  ;;  %v82_v9 = vld [vmem:[#allocation4 + $0x10] sm:$0xff]  ;;  %v83_v10 = vld [vmem:[#allocation4 + $0x18] sm:$0xff] }
  0x17   :  { %142 = vmatpush.msra.mxu1 %v93_v8  ;;  %v89_v11 = vld [vmem:[#allocation4 + $0x48] sm:$0xff]  ;;  %v79_v12 = vld [vmem:[#allocation2] sm:$0xff]  ;;  %123 = vmatpush.msra.mxu0 %v88_v7  ;;  %v84_v13 = vld [vmem:[#allocation4 + $0x20] sm:$0xff] }
  0x18   :  { %164 = vmatpush.msra.mxu2 %v86_v4  ;;  %184 = vmatpush.msra.mxu3 %v87_v5  ;;  %v85_v14 = vld [vmem:[#allocation4 + $0x28] sm:$0xff]  ;;  %v241_v15 = vld [vmem:[#allocation7 + $0x178] sm:$0xff]  ;;  %v240_v20 = vld [vmem:[#allocation7 + $0x170] sm:$0xff] }
  0x19   :  { %143 = vmatpush.msra.mxu1 %v89_v11  ;;  %v257_v16 = vld [vmem:[#allocation7 + $0x1f8] sm:$0xff]  ;;  %v81_v18 = vld [vmem:[#allocation4 + $0x8] sm:$0xff]  ;;  %124 = vmatpush.msra.mxu0 %v84_v13  ;;  %v256_v22 = vld [vmem:[#allocation7 + $0x1f0] sm:$0xff] }
  0x1a   :  { %165 = vmatpush.msra.mxu2 %v82_v9  ;;  %185 = vmatpush.msra.mxu3 %v83_v10  ;;  %v80_v17 = vld [vmem:[#allocation4] sm:$0xff]  ;;  %v208_v23 = vld [vmem:[#allocation7 + $0x70] sm:$0xff]  ;;  %v239_v24 = vld [vmem:[#allocation7 + $0x168] sm:$0xff] }
  0x1b   :  { %352 = vmatmul.msk.f32.vlgmr.msra.gmra.mxu2 %vm106_vm0, %v79_v12  ;;  %353 = vmatmul.msk.f32.vlgmr.msra.gmra.mxu3 %vm106_vm0, %v79_v12  ;;  %v209_v19 = vld [vmem:[#allocation7 + $0x78] sm:$0xff]  ;;  %v224_v25 = vld [vmem:[#allocation7 + $0xf0] sm:$0xff]  ;;  %v255_v26 = vld [vmem:[#allocation7 + $0x1e8] sm:$0xff] }
  0x1c   :  { %144 = vmatpush.msra.mxu1 %v85_v14  ;;  %302 = vmatpush.msrb.mxu2 %v241_v15  ;;  %v225_v21 = vld [vmem:[#allocation7 + $0xf8] sm:$0xff]  ;;  %v207_v27 = vld [vmem:[#allocation7 + $0x68] sm:$0xff]  ;;  %v238_v28 = vld [vmem:[#allocation7 + $0x160] sm:$0xff] }
  0x1d   :  { %322 = vmatpush.msrb.mxu3 %v257_v16  ;;  %125 = vmatpush.msra.mxu0 %v80_v17  ;;  %v223_v29 = vld [vmem:[#allocation7 + $0xe8] sm:$0xff]  ;;  %v254_v30 = vld [vmem:[#allocation7 + $0x1e0] sm:$0xff]  ;;  %v237_v32 = vld [vmem:[#allocation7 + $0x158] sm:$0xff] }
  0x1e   :  { %145 = vmatpush.msra.mxu1 %v81_v18  ;;  %350 = vmatmul.msk.f32.vlgmr.msra.gmra.mxu0 %vm106_vm0, %v79_v12  ;;  %v206_v31 = vld [vmem:[#allocation7 + $0x60] sm:$0xff]  ;;  %v253_v34 = vld [vmem:[#allocation7 + $0x1d8] sm:$0xff]  ;;  %v236_v36 = vld [vmem:[#allocation7 + $0x150] sm:$0xff] }
  0x1f   :  { %351 = vmatmul.msk.f32.vlgmr.msra.gmra.mxu1 %vm106_vm0, %v79_v12  ;;  %262 = vmatpush.msrb.mxu0 %v209_v19  ;;  %v222_v33 = vld [vmem:[#allocation7 + $0xe0] sm:$0xff]  ;;  %v205_v35 = vld [vmem:[#allocation7 + $0x58] sm:$0xff]  ;;  %v252_v38 = vld [vmem:[#allocation7 + $0x1d0] sm:$0xff] }
  0x20   :  { %303 = vmatpush.msrb.mxu2 %v240_v20  ;;  %282 = vmatpush.msrb.mxu1 %v225_v21  ;;  %v221_v37 = vld [vmem:[#allocation7 + $0xd8] sm:$0xff]  ;;  %v204_v39 = vld [vmem:[#allocation7 + $0x50] sm:$0xff]  ;;  %v235_v40 = vld [vmem:[#allocation7 + $0x148] sm:$0xff] }
  0x21   :  { %323 = vmatpush.msrb.mxu3 %v256_v22  ;;  %263 = vmatpush.msrb.mxu0 %v208_v23  ;;  %v220_v41 = vld [vmem:[#allocation7 + $0xd0] sm:$0xff]  ;;  %v251_v42 = vld [vmem:[#allocation7 + $0x1c8] sm:$0xff]  ;;  %v234_v44 = vld [vmem:[#allocation7 + $0x140] sm:$0xff] }
  0x22   :  { %304 = vmatpush.msrb.mxu2 %v239_v24  ;;  %283 = vmatpush.msrb.mxu1 %v224_v25  ;;  %v203_v43 = vld [vmem:[#allocation7 + $0x48] sm:$0xff]  ;;  %v250_v46 = vld [vmem:[#allocation7 + $0x1c0] sm:$0xff]  ;;  %v233_v48 = vld [vmem:[#allocation7 + $0x138] sm:$0xff] }
  0x23   :  { %324 = vmatpush.msrb.mxu3 %v255_v26  ;;  %264 = vmatpush.msrb.mxu0 %v207_v27  ;;  %v219_v45 = vld [vmem:[#allocation7 + $0xc8] sm:$0xff]  ;;  %v202_v47 = vld [vmem:[#allocation7 + $0x40] sm:$0xff]  ;;  %v249_v50 = vld [vmem:[#allocation7 + $0x1b8] sm:$0xff] }
  0x24   :  { %305 = vmatpush.msrb.mxu2 %v238_v28  ;;  %284 = vmatpush.msrb.mxu1 %v223_v29  ;;  %v218_v49 = vld [vmem:[#allocation7 + $0xc0] sm:$0xff]  ;;  %v201_v51 = vld [vmem:[#allocation7 + $0x38] sm:$0xff]  ;;  %v232_v52 = vld [vmem:[#allocation7 + $0x130] sm:$0xff] }
  0x25   :  { %325 = vmatpush.msrb.mxu3 %v254_v30  ;;  %265 = vmatpush.msrb.mxu0 %v206_v31  ;;  %v217_v53 = vld [vmem:[#allocation7 + $0xb8] sm:$0xff]  ;;  %v248_v54 = vld [vmem:[#allocation7 + $0x1b0] sm:$0xff]  ;;  %v231_v56 = vld [vmem:[#allocation7 + $0x128] sm:$0xff] }
  0x26   :  { %306 = vmatpush.msrb.mxu2 %v237_v32  ;;  %285 = vmatpush.msrb.mxu1 %v222_v33  ;;  %v200_v55 = vld [vmem:[#allocation7 + $0x30] sm:$0xff]  ;;  %v247_v58 = vld [vmem:[#allocation7 + $0x1a8] sm:$0xff]  ;;  %v230_v60 = vld [vmem:[#allocation7 + $0x120] sm:$0xff] }
  0x27   :  { %326 = vmatpush.msrb.mxu3 %v253_v34  ;;  %266 = vmatpush.msrb.mxu0 %v205_v35  ;;  %v216_v57 = vld [vmem:[#allocation7 + $0xb0] sm:$0xff]  ;;  %v199_v59 = vld [vmem:[#allocation7 + $0x28] sm:$0xff]  ;;  %v246_v62 = vld [vmem:[#allocation7 + $0x1a0] sm:$0xff] }
  0x28   :  { %307 = vmatpush.msrb.mxu2 %v236_v36  ;;  %286 = vmatpush.msrb.mxu1 %v221_v37  ;;  %v215_v61 = vld [vmem:[#allocation7 + $0xa8] sm:$0xff]  ;;  %v198_v63 = vld [vmem:[#allocation7 + $0x20] sm:$0xff]  ;;  %v229_v0 = vld [vmem:[#allocation7 + $0x118] sm:$0xff] }
  0x29   :  { %327 = vmatpush.msrb.mxu3 %v252_v38  ;;  %267 = vmatpush.msrb.mxu0 %v204_v39  ;;  %v197_v1 = vld [vmem:[#allocation7 + $0x18] sm:$0xff]  ;;  %v214_v2 = vld [vmem:[#allocation7 + $0xa0] sm:$0xff]  ;;  %v228_v3 = vld [vmem:[#allocation7 + $0x110] sm:$0xff] }
  0x2a   :  { %308 = vmatpush.msrb.mxu2 %v235_v40  ;;  %287 = vmatpush.msrb.mxu1 %v220_v41  ;;  %v245_v4 = vld [vmem:[#allocation7 + $0x198] sm:$0xff]  ;;  %v196_v5 = vld [vmem:[#allocation7 + $0x10] sm:$0xff]  ;;  %v227_v7 = vld [vmem:[#allocation7 + $0x108] sm:$0xff] }
  0x2b   :  { %328 = vmatpush.msrb.mxu3 %v251_v42  ;;  %268 = vmatpush.msrb.mxu0 %v203_v43  ;;  %v213_v6 = vld [vmem:[#allocation7 + $0x98] sm:$0xff]  ;;  %v244_v8 = vld [vmem:[#allocation7 + $0x190] sm:$0xff]  ;;  %v195_v9 = vld [vmem:[#allocation7 + $0x8] sm:$0xff] }
  0x2c   :  { %309 = vmatpush.msrb.mxu2 %v234_v44  ;;  %288 = vmatpush.msrb.mxu1 %v219_v45  ;;  %v212_v10 = vld [vmem:[#allocation7 + $0x90] sm:$0xff]  ;;  %v226_v11 = vld [vmem:[#allocation7 + $0x100] sm:$0xff]  ;;  %v243_v12 = vld [vmem:[#allocation7 + $0x188] sm:$0xff] }
  0x2d   :  { %329 = vmatpush.msrb.mxu3 %v250_v46  ;;  %269 = vmatpush.msrb.mxu0 %v202_v47  ;;  %v194_v13 = vld [vmem:[#allocation7] sm:$0xff]  ;;  %v211_v14 = vld [vmem:[#allocation7 + $0x88] sm:$0xff]  ;;  %v96_v17 = vld [vmem:[#allocation6] sm:$0xf] }
  0x2e   :  { %310 = vmatpush.msrb.mxu2 %v233_v48  ;;  %289 = vmatpush.msrb.mxu1 %v218_v49  ;;  %v242_v15 = vld [vmem:[#allocation7 + $0x180] sm:$0xff]  ;;  %v98_v18 = vperm.slane %v96_v17, 0  ;;  %v99_v19 = vperm.slane %v96_v17, 1  ;;  %v100_v20 = vperm.slane %v96_v17, 2  ;;  %v101_v21 = vperm.slane %v96_v17, 3 }
  0x2f   :  { %330 = vmatpush.msrb.mxu3 %v249_v50  ;;  %270 = vmatpush.msrb.mxu0 %v201_v51  ;;  %v210_v16 = vld [vmem:[#allocation7 + $0x80] sm:$0xff]  ;;  %v362_v34 = vld [vmem:[%s529_s4] ss:$0 sm:$0xff] }
  0x30   :  { %311 = vmatpush.msrb.mxu2 %v232_v52  ;;  %290 = vmatpush.msrb.mxu1 %v217_v53 }
  0x31   :  { %331 = vmatpush.msrb.mxu3 %v248_v54  ;;  %271 = vmatpush.msrb.mxu0 %v200_v55 }
  0x32   :  { %312 = vmatpush.msrb.mxu2 %v231_v56  ;;  %291 = vmatpush.msrb.mxu1 %v216_v57 }
  0x33   :  { %332 = vmatpush.msrb.mxu3 %v247_v58  ;;  %272 = vmatpush.msrb.mxu0 %v199_v59 }
  0x34   :  { %313 = vmatpush.msrb.mxu2 %v230_v60  ;;  %292 = vmatpush.msrb.mxu1 %v215_v61 }
  0x35   :  { %333 = vmatpush.msrb.mxu3 %v246_v62  ;;  %273 = vmatpush.msrb.mxu0 %v198_v63 }
  0x36   :  { %314 = vmatpush.msrb.mxu2 %v229_v0  ;;  %293 = vmatpush.msrb.mxu1 %v214_v2 }
  0x37   :  { %274 = vmatpush.msrb.mxu0 %v197_v1  ;;  %334 = vmatpush.msrb.mxu3 %v245_v4 }
  0x38   :  { %315 = vmatpush.msrb.mxu2 %v228_v3  ;;  %294 = vmatpush.msrb.mxu1 %v213_v6 }
  0x39   :  { %275 = vmatpush.msrb.mxu0 %v196_v5  ;;  %335 = vmatpush.msrb.mxu3 %v244_v8 }
  0x3a   :  { %316 = vmatpush.msrb.mxu2 %v227_v7  ;;  %295 = vmatpush.msrb.mxu1 %v212_v10 }
  0x3b   :  { %276 = vmatpush.msrb.mxu0 %v195_v9  ;;  %336 = vmatpush.msrb.mxu3 %v243_v12 }
  0x3c   :  { %317 = vmatpush.msrb.mxu2 %v226_v11  ;;  %296 = vmatpush.msrb.mxu1 %v211_v14 }
  0x3d   :  { %277 = vmatpush.msrb.mxu0 %v194_v13  ;;  %337 = vmatpush.msrb.mxu3 %v242_v15 }
  0x3e   :  { %297 = vmatpush.msrb.mxu1 %v210_v16 }
  0x9b   :  { %v127_v22 = vpop.f32.mrf.mxu0 }
  0x9c   :  { %v147_v23 = vpop.f32.mrf.mxu1  ;;  %v128_v24 = vadd.f32 %v127_v22, %v98_v18 }
  0x9d   :  { %v148_v25 = vadd.f32 %v147_v23, %v99_v19 }
  0x9e   :  { %v167_v26 = vpop.f32.mrf.mxu2  ;;  %v187_v27 = vpop.f32.mrf.mxu3  ;;  %v190_v29 = vmax.f32 %v128_v24, 0.0 }
  0x9f   :  { %v168_v28 = vadd.f32 %v167_v26, %v100_v20  ;;  %v188_v30 = vadd.f32 %v187_v27, %v101_v21  ;;  %v191_v31 = vmax.f32 %v148_v25, 0.0 }
  0xa0   :  { %278 = vmatmul.f32.vlgmr.msrb.gmra.mxu0 %v190_v29 }
  0xa1   :  { %v192_v32 = vmax.f32 %v168_v28, 0.0  ;;  %v193_v33 = vmax.f32 %v188_v30, 0.0  ;;  %298 = vmatmul.f32.vlgmr.msrb.gmra.mxu1 %v191_v31 }
  0xa3   :  { %318 = vmatmul.f32.vlgmr.msrb.gmra.mxu2 %v192_v32  ;;  %338 = vmatmul.f32.vlgmr.msrb.gmra.mxu3 %v193_v33 }
 0x11d   :  { %v279_v35 = vpop.f32.mrf.mxu0 }
 0x11e   :  { %v280_v36 = vadd.f32 %v362_v34, %v279_v35  ;;  %v299_v37 = vpop.f32.mrf.mxu1 }
 0x120   :  { %v300_v38 = vadd.f32 %v299_v37, %v280_v36 }
 0x126   :  { %v319_v39 = vpop.f32.mrf.mxu2  ;;  %v339_v40 = vpop.f32.mrf.mxu3 }
 0x127   :  { %v320_v41 = vadd.f32 %v319_v39, %v300_v38 }
 0x129   :  { %v340_v42 = vadd.f32 %v339_v40, %v320_v41 }
 0x12b   :  { %342 = vst [vmem:[%s530_s5] sm:$0xff] %v340_v42 }
 0x12c   :  { %347 = vsyncpa [#allocation3], 1 }
 0x12d   :  { %348 = vsyncpa [#allocation5], 1 }
 0x12e   :  { %349 = vsyncpa [#allocation8], 1 }

</bundles_post_ra>
